<compile_context>
chip_gen: v6e
topology: v6e:2x2x1
jax: 0.10.0
libtpu: 0.0.40
codegen_flags: <defaults>
</compile_context>

<pallas_src>
import functools
import math

import jax
import jax.numpy as jnp
from jax.experimental import pallas as pl
from jax.experimental.pallas import tpu as pltpu

_VMEM_LIMIT_BYTES = 48 * 1024 * 1024   # <= v7x physical (64 MiB), ample on v5e/v6e
_VMEM_BUDGET_BYTES = 40 * 1024 * 1024  # working-set target for tile picking


def _xxt(a, b):
    """a @ b.T without materializing the transpose (contract last dims)."""
    return jax.lax.dot_general(a, b, (((1,), (1,)), ((), ())),
                               preferred_element_type=jnp.float32)


def _normalize_kernel(p1_ref, p2_ref, z1_ref, z2_ref, *, scale, dim):
    """Row-wise L2 normalize (F.normalize semantics), fold sqrt(1/T) into the
    rows, and zero-pad the embedding dim to the lane-dense output width."""
    p1 = p1_ref[...].astype(jnp.float32)
    p2 = p2_ref[...].astype(jnp.float32)
    # F.normalize: x / max(||x||, 1e-12) == x * rsqrt(max(||x||^2, 1e-24)).
    eps2 = jnp.float32(1e-24)
    s = jnp.float32(scale)
    inv1 = jax.lax.rsqrt(jnp.maximum(jnp.sum(p1 * p1, axis=1, keepdims=True), eps2))
    inv2 = jax.lax.rsqrt(jnp.maximum(jnp.sum(p2 * p2, axis=1, keepdims=True), eps2))
    z1 = p1 * (inv1 * s)
    z2 = p2 * (inv2 * s)
    d_pad = z1_ref.shape[1]
    if d_pad != dim:  # fold the lane padding into this pass (zeros keep dots exact)
        pad = jnp.zeros((z1.shape[0], d_pad - dim), jnp.float32)
        z1 = jnp.concatenate([z1, pad], axis=1)
        z2 = jnp.concatenate([z2, pad], axis=1)
    z1_ref[...] = z1.astype(z1_ref.dtype)
    z2_ref[...] = z2.astype(z2_ref.dtype)


def _loss_kernel(row_ids_ref, col_ids_ref,
                 q1_ref, q2_ref, k1_ref, k2_ref,
                 out_ref, dtop_ref, dbot_ref, pos_ref,
                 *, inv_two_b, col_pad, pad_row_loss):
    p = pl.program_id(0)
    i = row_ids_ref[p]
    j = col_ids_ref[p]

    @pl.when(p == 0)
    def _init():
        dtop_ref[...] = jnp.zeros_like(dtop_ref)
        dbot_ref[...] = jnp.zeros_like(dbot_ref)
        pos_ref[...] = jnp.zeros_like(pos_ref)

    q1 = q1_ref[...]
    q2 = q2_ref[...]
    k1 = k1_ref[...]
    k2 = k2_ref[...]

    # Rows already carry sqrt(1/T): every block comes out of the MXU as sim/T.
    e11 = jnp.exp(_xxt(q1, k1))
    e12 = jnp.exp(_xxt(q1, k2))
    e22 = jnp.exp(_xxt(q2, k2))

    r11 = jnp.sum(e11, axis=1, keepdims=True)                    # (bm, 1)
    r12 = jnp.sum(e12, axis=1, keepdims=True)
    r22 = jnp.sum(e22, axis=1, keepdims=True)
    c12 = jnp.transpose(jnp.sum(e12, axis=0, keepdims=True))     # (bm, 1)

    @pl.when(i == j)
    def _diag():
        # s21(i,i) == s12(i,i).T -> its row sums are c12; e21 matmul skipped.
        q1f = q1.astype(jnp.float32)
        q2f = q2.astype(jnp.float32)
        pos_ref[i] = jnp.sum(q1f * q2f, axis=1, keepdims=True)         # positives / T
        self_top = jnp.exp(jnp.sum(q1f * q1f, axis=1, keepdims=True))  # == diag(e11)
        self_bot = jnp.exp(jnp.sum(q2f * q2f, axis=1, keepdims=True))  # == diag(e22)
        dtop_ref[i] = dtop_ref[i] + (r11 + r12 - self_top)
        dbot_ref[i] = dbot_ref[i] + (r22 + c12 - self_bot)

    @pl.when(i != j)
    def _off_diag():
        # One extra matmul covers the (j, i) tiles of all four quadrants:
        # row sums feed row-tile i, column sums feed row-tile j.
        e21 = jnp.exp(_xxt(q2, k1))
        r21 = jnp.sum(e21, axis=1, keepdims=True)
        c11 = jnp.transpose(jnp.sum(e11, axis=0, keepdims=True))
        c22 = jnp.transpose(jnp.sum(e22, axis=0, keepdims=True))
        c21 = jnp.transpose(jnp.sum(e21, axis=0, keepdims=True))
        dtop_ref[i] = dtop_ref[i] + (r11 + r12)
        dbot_ref[i] = dbot_ref[i] + (r22 + r21)
        dtop_ref[j] = dtop_ref[j] + (c11 + c21)
        dbot_ref[j] = dbot_ref[j] + (c22 + c12)

    @pl.when(p == pl.num_programs(0) - 1)
    def _finalize():
        # Padded rows/cols are all-zero embeddings: each contributes exp(0)=1,
        # removed exactly by compile-time constants (col_pad, pad_row_loss).
        d_top = dtop_ref[...] - jnp.float32(col_pad)
        d_bot = dbot_ref[...] - jnp.float32(col_pad)
        per_row = jnp.log(d_top) + jnp.log(d_bot) - 2.0 * pos_ref[...]
        total = jnp.sum(jnp.sum(per_row, axis=0)) - jnp.float32(pad_row_loss)
        out_ref[0, 0] = total * jnp.float32(inv_two_b)


def _pick_block_rows(batch, d_pad, in_bytes):
    """Largest row tile (multiple of 8) whose working set fits the VMEM budget."""
    def fits(bm):
        n_tiles = -(-batch // bm)
        inputs = 4 * 2 * bm * d_pad * in_bytes    # 4 operand tiles, double buffered
        blocks = 6 * bm * bm * 4                  # dot / exp / transpose intermediates
        acc = 3 * n_tiles * bm * 128 * 4          # (T, bm, 1) scratch, lane padded
        return inputs + blocks + acc <= _VMEM_BUDGET_BYTES
    for t in (1024, 768, 512, 384, 256, 128, 64, 32, 16, 8):
        if t <= max(batch, 8) and fits(t):
            return t
    return 8


def _pick_norm_rows(batch_pad, dim, d_pad, out_bytes):
    """Row tile for the bandwidth-bound normalize pre-pass (divides batch_pad)."""
    budget = 8 * 1024 * 1024
    per_row = 2 * 2 * (dim * 4 + d_pad * out_bytes)  # 2 arrays x 2 buffers, in + out
    cap = max(8, budget // max(per_row, 1))
    best = 8
    for t in range(8, batch_pad + 1, 8):
        if batch_pad % t == 0 and t <= cap:
            best = t
    return best


def contrastive_loss(proj_1, proj_2, temperature=0.5, *, block_rows=None,
                     use_bf16_matmul=False):
    """Pallas TPU implementation of ContrastiveLoss.forward -> scalar loss."""
    batch, dim = proj_1.shape
    d_pad = ((dim + 127) // 128) * 128
    z_dtype = jnp.bfloat16 if use_bf16_matmul else jnp.float32
    z_bytes = 2 if use_bf16_matmul else 4

    if block_rows is None:
        block_rows = _pick_block_rows(batch, d_pad, z_bytes)
    assert block_rows % 8 == 0 and block_rows > 0, block_rows
    batch_pad = -(-batch // block_rows) * block_rows
    n_row_pad = batch_pad - batch
    num_tiles = batch_pad // block_rows

    p1, p2 = proj_1, proj_2
    if n_row_pad:
        # Zero rows L2-normalize to exactly zero -> padded rows/cols only add
        # exp(0)=1 terms, corrected by compile-time constants in the kernel.
        p1 = jnp.pad(p1, ((0, n_row_pad), (0, 0)))
        p2 = jnp.pad(p2, ((0, n_row_pad), (0, 0)))

    inv_t = 1.0 / float(temperature)
    scale = math.sqrt(inv_t)

    # --- pre-pass: normalize once, fold sqrt(1/T), pad lanes, cast once -----
    norm_rows = _pick_norm_rows(batch_pad, dim, d_pad, z_bytes)
    in_spec = pl.BlockSpec((norm_rows, dim), lambda i: (i, 0))
    out_spec = pl.BlockSpec((norm_rows, d_pad), lambda i: (i, 0))
    z1, z2 = pl.pallas_call(
        functools.partial(_normalize_kernel, scale=scale, dim=dim),
        grid=(batch_pad // norm_rows,),
        out_shape=(jax.ShapeDtypeStruct((batch_pad, d_pad), z_dtype),
                   jax.ShapeDtypeStruct((batch_pad, d_pad), z_dtype)),
        in_specs=[in_spec, in_spec],
        out_specs=(out_spec, out_spec),
        compiler_params=pltpu.CompilerParams(
            dimension_semantics=("parallel",),
            vmem_limit_bytes=_VMEM_LIMIT_BYTES),
    )(p1, p2)

    # --- main pass: upper-triangular tile walk over the 2B x 2B Gram space --
    # TODO(synk): on v7x the 1-D "arbitrary" pair grid leaves the second
    # TensorCore idle; a core_map split of the pair list would recover it.
    pairs_i, pairs_j = [], []
    for a in range(num_tiles):
        for b in range(a, num_tiles):    # same-i pairs consecutive -> q-tile DMA reuse
            pairs_i.append(a)
            pairs_j.append(b)
    row_ids = jnp.asarray(pairs_i, dtype=jnp.int32)
    col_ids = jnp.asarray(pairs_j, dtype=jnp.int32)

    q_spec = pl.BlockSpec((block_rows, d_pad), lambda p, rid, cid: (rid[p], 0))
    k_spec = pl.BlockSpec((block_rows, d_pad), lambda p, rid, cid: (cid[p], 0))

    kernel = functools.partial(
        _loss_kernel,
        inv_two_b=1.0 / (2.0 * batch),
        col_pad=2.0 * n_row_pad,
        pad_row_loss=(2.0 * n_row_pad * math.log(2.0 * batch - 1.0)
                      if n_row_pad else 0.0))

    loss = pl.pallas_call(
        kernel,
        grid_spec=pltpu.PrefetchScalarGridSpec(
            num_scalar_prefetch=2,
            grid=(len(pairs_i),),
            in_specs=[q_spec, q_spec, k_spec, k_spec],
            out_specs=pl.BlockSpec(memory_space=pltpu.MemorySpace.SMEM),
            scratch_shapes=[pltpu.VMEM((num_tiles, block_rows, 1), jnp.float32),
                            pltpu.VMEM((num_tiles, block_rows, 1), jnp.float32),
                            pltpu.VMEM((num_tiles, block_rows, 1), jnp.float32)]),
        out_shape=jax.ShapeDtypeStruct((1, 1), jnp.float32),
        compiler_params=pltpu.CompilerParams(
            dimension_semantics=("arbitrary",),
            vmem_limit_bytes=_VMEM_LIMIT_BYTES),
    )(row_ids, col_ids, z1, z2, z1, z2)

    return loss[0, 0]


def _contrastive_loss_ref(proj_1, proj_2, temperature=0.5):
    """Pure-JAX reference mirroring the PyTorch module, for verification."""
    b = proj_1.shape[0]
    eps = 1e-12

    def norm(x):
        return x / jnp.maximum(jnp.linalg.norm(x, axis=1, keepdims=True), eps)

    z_i = norm(proj_1.astype(jnp.float32))
    z_j = norm(proj_2.astype(jnp.float32))
    reps = jnp.concatenate([z_i, z_j], axis=0)
    sim = reps @ reps.T
    sim_ij = jnp.diagonal(sim, offset=b)
    sim_ji = jnp.diagonal(sim, offset=-b)
    positives = jnp.concatenate([sim_ij, sim_ji], axis=0)
    nominator = jnp.exp(positives / temperature)
    mask = 1.0 - jnp.eye(2 * b, dtype=jnp.float32)
    denominator = mask * jnp.exp(sim / temperature)
    all_losses = -jnp.log(nominator / jnp.sum(denominator, axis=1))
    return jnp.sum(all_losses) / (2 * b)


if __name__ == "__main__":
    temperature = 0.5
    key = jax.random.PRNGKey(0)
    ks = jax.random.split(key, 8)

    # 1) tiny batch -> single diagonal tile (3 matmuls, e21 recovered as e12.T)
    p1 = jax.random.normal(ks[0], (8, 32), jnp.float32)
    p2 = jax.random.normal(ks[1], (8, 32), jnp.float32)
    out1 = jax.block_until_ready(contrastive_loss(p1, p2, temperature))
    ref1 = jax.block_until_ready(_contrastive_loss_ref(p1, p2, temperature))
    assert jnp.allclose(out1, ref1, rtol=1e-5, atol=1e-5), (out1, ref1)

    # 2) forced 2-tile row space -> upper-triangular walk with off-diagonal pairs
    p3 = jax.random.normal(ks[2], (128, 32), jnp.float32)
    p4 = jax.random.normal(ks[3], (128, 32), jnp.float32)
    out2 = jax.block_until_ready(
        contrastive_loss(p3, p4, temperature, block_rows=64))
    ref2 = jax.block_until_ready(_contrastive_loss_ref(p3, p4, temperature))
    assert jnp.allclose(out2, ref2, rtol=1e-5, atol=1e-5), (out2, ref2)

    # 3) ragged batch + non-128 dim -> zero-row padding path with exact constants
    p5 = jax.random.normal(ks[4], (12, 40), jnp.float32)
    p6 = jax.random.normal(ks[5], (12, 40), jnp.float32)
    out3 = jax.block_until_ready(contrastive_loss(p5, p6, temperature))
    ref3 = jax.block_until_ready(_contrastive_loss_ref(p5, p6, temperature))
    assert jnp.allclose(out3, ref3, rtol=1e-5, atol=1e-5), (out3, ref3)

    # 4) bf16 MXU path (z cast once in the pre-pass); looser tolerance
    p7 = jax.random.normal(ks[6], (64, 32), jnp.float32)
    p8 = jax.random.normal(ks[7], (64, 32), jnp.float32)
    out4 = jax.block_until_ready(
        contrastive_loss(p7, p8, temperature, block_rows=32, use_bf16_matmul=True))
    ref4 = jax.block_until_ready(_contrastive_loss_ref(p7, p8, temperature))
    assert jnp.allclose(out4, ref4, rtol=5e-2, atol=5e-2), (out4, ref4)

    print("KERNEL_OK")
</pallas_src>

<mosaic_0001>
module attributes {stable_mosaic.version = 11 : i64} {
  func.func @_normalize_kernel(%arg0: i32, %arg1: memref<8x32xf32, #tpu.memory_space<vmem>>, %arg2: memref<8x32xf32, #tpu.memory_space<vmem>>, %arg3: memref<8x128xf32, #tpu.memory_space<vmem>>, %arg4: memref<8x128xf32, #tpu.memory_space<vmem>>) attributes {dimension_semantics = [#tpu.dimension_semantics<parallel>], iteration_bounds = array<i64: 1>, scalar_prefetch = 0 : i64, scratch_operands = 0 : i64, tpu.core_type = #tpu.core_type<tc>, window_params = [{transform_indices = @transform_0, window_bounds = array<i64: 8, 32>}, {transform_indices = @transform_1, window_bounds = array<i64: 8, 32>}, {transform_indices = @transform_2, window_bounds = array<i64: 8, 128>}, {transform_indices = @transform_3, window_bounds = array<i64: 8, 128>}]} {
    %c0 = arith.constant 0 : index
    %c0_0 = arith.constant 0 : index
    %0 = vector.load %arg1[%c0, %c0_0] : memref<8x32xf32, #tpu.memory_space<vmem>>, vector<8x32xf32>
    %c0_1 = arith.constant 0 : index
    %c0_2 = arith.constant 0 : index
    %1 = vector.load %arg2[%c0_1, %c0_2] : memref<8x32xf32, #tpu.memory_space<vmem>>, vector<8x32xf32>
    %2 = arith.mulf %0, %0 : vector<8x32xf32>
    %cst = arith.constant dense<0.000000e+00> : vector<8xf32>
    %3 = vector.multi_reduction <add>, %2, %cst [1] : vector<8x32xf32> to vector<8xf32>
    %4 = vector.shape_cast %3 : vector<8xf32> to vector<8x1xf32>
    %cst_3 = arith.constant 1.000000e-24 : f32
    %5 = vector.broadcast %cst_3 : f32 to vector<8x1xf32>
    %6 = arith.maximumf %4, %5 : vector<8x1xf32>
    %7 = math.rsqrt %6 : vector<8x1xf32>
    %8 = arith.mulf %1, %1 : vector<8x32xf32>
    %cst_4 = arith.constant dense<0.000000e+00> : vector<8xf32>
    %9 = vector.multi_reduction <add>, %8, %cst_4 [1] : vector<8x32xf32> to vector<8xf32>
    %10 = vector.shape_cast %9 : vector<8xf32> to vector<8x1xf32>
    %cst_5 = arith.constant 1.000000e-24 : f32
    %11 = vector.broadcast %cst_5 : f32 to vector<8x1xf32>
    %12 = arith.maximumf %10, %11 : vector<8x1xf32>
    %13 = math.rsqrt %12 : vector<8x1xf32>
    %cst_6 = arith.constant 1.41421354 : f32
    %14 = vector.broadcast %cst_6 : f32 to vector<8x1xf32>
    %15 = arith.mulf %7, %14 : vector<8x1xf32>
    %16 = vector.broadcast %15 : vector<8x1xf32> to vector<8x32xf32>
    %17 = arith.mulf %0, %16 : vector<8x32xf32>
    %cst_7 = arith.constant 1.41421354 : f32
    %18 = vector.broadcast %cst_7 : f32 to vector<8x1xf32>
    %19 = arith.mulf %13, %18 : vector<8x1xf32>
    %20 = vector.broadcast %19 : vector<8x1xf32> to vector<8x32xf32>
    %21 = arith.mulf %1, %20 : vector<8x32xf32>
    %cst_8 = arith.constant 0.000000e+00 : f32
    %22 = vector.broadcast %cst_8 : f32 to vector<8x96xf32>
    %23 = tpu.concatenate %17, %22 in 1 : vector<8x32xf32>, vector<8x96xf32> -> vector<8x128xf32>
    %24 = tpu.concatenate %21, %22 in 1 : vector<8x32xf32>, vector<8x96xf32> -> vector<8x128xf32>
    %c0_9 = arith.constant 0 : index
    %c0_10 = arith.constant 0 : index
    %25 = vector.load %arg3[%c0_9, %c0_10] : memref<8x128xf32, #tpu.memory_space<vmem>>, vector<8x128xf32>
    tpu.vector_store %arg3[%c0_9, %c0_10], %23 {strides = array<i32>} : memref<8x128xf32, #tpu.memory_space<vmem>>, vector<8x128xf32>,
    %c0_11 = arith.constant 0 : index
    %c0_12 = arith.constant 0 : index
    %26 = vector.load %arg4[%c0_11, %c0_12] : memref<8x128xf32, #tpu.memory_space<vmem>>, vector<8x128xf32>
    tpu.vector_store %arg4[%c0_11, %c0_12], %24 {strides = array<i32>} : memref<8x128xf32, #tpu.memory_space<vmem>>, vector<8x128xf32>,
    return
  }
  func.func @transform_0(%arg0: i32) -> (i32, i32) {
    %c0_i32 = arith.constant 0 : i32
    %c0_i32_0 = arith.constant 0 : i32
    return %arg0, %c0_i32 : i32, i32
  }
  func.func @transform_1(%arg0: i32) -> (i32, i32) {
    %c0_i32 = arith.constant 0 : i32
    %c0_i32_0 = arith.constant 0 : i32
    return %arg0, %c0_i32 : i32, i32
  }
  func.func @transform_2(%arg0: i32) -> (i32, i32) {
    %c0_i32 = arith.constant 0 : i32
    %c0_i32_0 = arith.constant 0 : i32
    return %arg0, %c0_i32 : i32, i32
  }
  func.func @transform_3(%arg0: i32) -> (i32, i32) {
    %c0_i32 = arith.constant 0 : i32
    %c0_i32_0 = arith.constant 0 : i32
    return %arg0, %c0_i32 : i32, i32
  }
}

</mosaic_0001>

<bundles_post_ra>
// kernel: tpu_custom_call.1
= control target key start
LH: loop header
LB: loop body
LE: loop exit
PB: predicated region body
PF: predicated region fallthrough
CT: control target
= control target key end

     0   :  { %9 = vsyncpa [#allocation3], 0  ;;  %s228_s0 = inlined_call_operand.hbm [shape: f32[8,32], index: 0, kind: input, shape index: {}]   ;;  %s229_s1 = inlined_call_operand.hbm [shape: f32[8,32], index: 1, kind: input, shape index: {}]   ;;  %s230_s2 = inlined_call_operand.hbm [shape: f32[8,128], index: 2, kind: output, shape index: {0}]   ;;  %s231_s3 = inlined_call_operand.hbm [shape: f32[8,128], index: 3, kind: output, shape index: {1}]  }
   0x1   :  { %10 = vsyncpa [#allocation6], 0 }
   0x2   :  { %11 = vsyncpa [#allocation4], 0 }
   0x3   :  { %12 = vsyncpa [#allocation9], 0  ;;  %s188_s12 = smov [#allocation2]   ;;  %s189_s14 = smov [#allocation5]  }
   0x4   :  { %s19_s13 = sshll.u32 %s188_s12, 4  ;;  %s29_s15 = sshll.u32 %s189_s14, 4  ;;  %s20_s13 = int_to_ptr.vmem [resolvable:$true] %s19_s13  ;;  %s30_s15 = int_to_ptr.vmem [resolvable:$true] %s29_s15 }
   0x5   :  { %s108_s16 = scalar_lea.vmem %s20_s13, 128  ;;  %p113_p1 = scmp.lt.s32.totalorder %s20_s13, %s20_s13 }
   0x6   :  { %p109_p0 = scmp.ne.s32.totalorder %s20_s13, %s108_s16  ;;  %p114_p2 = scmp.lt.s32.totalorder %s108_s16, %s108_s16 }
   0x8   :  { %p115_p3 = por %p114_p2, %p113_p1 }
   0xa   :  { %p116_p4 = pnand %p115_p3, %p109_p0 }
   0xc   :  { %119 = shalt.err (!%p116_p4)
}
   0xd   :  { %22 = dma.hbm_to_vmem [thread:$0]  %s228_s0, 128, %s20_s13, [#allocation3]  }
   0xe   :  { %s128_s19 = scalar_lea.vmem %s30_s15, 128  ;;  %p133_p6 = scmp.lt.s32.totalorder %s30_s15, %s30_s15 }
   0xf   :  { %p129_p5 = scmp.ne.s32.totalorder %s30_s15, %s128_s19  ;;  %p134_p7 = scmp.lt.s32.totalorder %s128_s19, %s128_s19 }
  0x11   :  { %p135_p8 = por %p134_p7, %p133_p6 }
  0x13   :  { %p136_p9 = pnand %p135_p8, %p129_p5 }
  0x15   :  { %139 = shalt.err (!%p136_p9)
}
  0x16   :  { %32 = dma.hbm_to_vmem [thread:$0]  %s229_s1, 128, %s30_s15, [#allocation6]  }
  0x17   :  { %180 = dma.done.wait [#allocation3], 128  }
  0x18   :  { %181 = vsyncadd [#allocation3], 4294967168 }
  0x19   :  { %182 = dma.done.wait [#allocation6], 128  }
  0x1a   :  { %183 = vsyncadd [#allocation6], 4294967168  ;;  %v39_v0 = vld [vmem:[#allocation2] sm:$0xff]  ;;  %vm42_vm0 = vcmask 261120   ;;  %v40_v1 = vld [vmem:[#allocation5] sm:$0xff]  ;;  %s190_s0 = smov [#allocation7]  }
  0x1b   :  { %v41_v2 = vmul.f32 %v39_v0, %v39_v0  ;;  %v48_v3 = vmul.f32 %v40_v1, %v40_v1  ;;  %s68_s1 = sshll.u32 %s190_s0, 4  ;;  %s191_s22 = smov [#allocation8]   ;;  %s69_s1 = int_to_ptr.vmem [resolvable:$true] %s68_s1 }
  0x1c   :  { %s78_s23 = sshll.u32 %s191_s22, 4  ;;  %s140_s24 = scalar_lea.vmem %s69_s1, 128  ;;  %s79_s23 = int_to_ptr.vmem [resolvable:$true] %s78_s23 }
  0x1d   :  { %v43_v4 = vsel %vm42_vm0, %v41_v2, 0.0  ;;  %v49_v5 = vsel %vm42_vm0, %v48_v3, 0.0  ;;  %p141_p10 = scmp.ne.s32.totalorder %s69_s1, %s140_s24  ;;  %p145_p11 = scmp.lt.s32.totalorder %s69_s1, %s69_s1 }
  0x1e   :  { %44 = vadd.xlane.f32.xlu0 %v43_v4  ;;  %p146_p12 = scmp.lt.s32.totalorder %s140_s24, %s140_s24 }
  0x20   :  { %p147_p13 = por %p146_p12, %p145_p11 }
  0x22   :  { %50 = vadd.xlane.f32.xlu0 %v49_v5  ;;  %p148_p0 = pnand %p147_p13, %p141_p10 }
  0xa7   :  { %v45_v6 = vpop.xlane.xlu0 %44 }
  0xa8   :  { %v46_v7 = vmax.f32 %v45_v6, 1e-24 }
  0xaa   :  { %96 = vrsqrt.f32 %v46_v7 }
  0xab   :  { %v51_v8 = vpop.xlane.xlu0 %50 }
  0xac   :  { %v52_v9 = vmax.f32 %v51_v8, 1e-24 }
  0xae   :  { %98 = vrsqrt.f32 %v52_v9 }
  0xb7   :  { %v97_v10 = vpop.eup %96 }
  0xb8   :  { %v54_v11 = vmul.f32 1.4142135, %v97_v10 }
  0xba   :  { %v55_v12 = vmul.f32 %v54_v11, %v39_v0 }
  0xbb   :  { %v99_v13 = vpop.eup %98 }
  0xbc   :  { %v56_v14 = vmul.f32 1.4142135, %v99_v13  ;;  %v58_v15 = vsel %vm42_vm0, %v55_v12, 0.0 }
  0xbd   :  { %60 = vst [vmem:[#allocation7] sm:$0xff] %v58_v15 }
  0xbe   :  { %151 = shalt.err (!%p148_p0)
}
  0xbf   :  { %71 = dma.vmem_to_hbm [thread:$0]  %s69_s1, 128, %s230_s2, [#allocation4]   ;;  %v57_v16 = vmul.f32 %v56_v14, %v40_v1 }
  0xc0   :  { %s160_s27 = scalar_lea.vmem %s79_s23, 128  ;;  %p165_p2 = scmp.lt.s32.totalorder %s79_s23, %s79_s23 }
  0xc1   :  { %v59_v17 = vsel %vm42_vm0, %v57_v16, 0.0  ;;  %p161_p1 = scmp.ne.s32.totalorder %s79_s23, %s160_s27  ;;  %p166_p3 = scmp.lt.s32.totalorder %s160_s27, %s160_s27 }
  0xc2   :  { %61 = vst [vmem:[#allocation8] sm:$0xff] %v59_v17 }
  0xc3   :  { %p167_p4 = por %p166_p3, %p165_p2 }
  0xc5   :  { %p168_p5 = pnand %p167_p4, %p161_p1 }
  0xc7   :  { %171 = shalt.err (!%p168_p5)
}
  0xc8   :  { %81 = dma.vmem_to_hbm [thread:$0]  %s79_s23, 128, %s231_s3, [#allocation9]  }
  0xc9   :  { %184 = dma.done.wait [#allocation4], 128  }
  0xca   :  { %185 = vsyncadd [#allocation4], 4294967168 }
  0xcb   :  { %186 = dma.done.wait [#allocation9], 128  }
  0xcc   :  { %187 = vsyncadd [#allocation9], 4294967168 }
  0xcd   :  { %88 = vsyncpa [#allocation3], 1 }
  0xce   :  { %89 = vsyncpa [#allocation6], 1 }
  0xcf   :  { %90 = vsyncpa [#allocation4], 1 }
  0xd0   :  { %91 = vsyncpa [#allocation9], 1 }

</bundles_post_ra>
